<compile_context>
chip_gen: v7x
topology: tpu7x:2x2x1
jax: 0.10.0
libtpu: 0.0.40
codegen_flags: <defaults>
</compile_context>

<pallas_src>
import jax
import jax.numpy as jnp
from jax.experimental import pallas as pl
from jax.experimental.pallas import tpu as pltpu

B = 128        # batch (lane dimension inside the kernel)
D = 31         # state dimension (x has D+1 columns, last is the logp channel)
H = 32         # MLP hidden width
LOGP_TOL_SCALE = 1.0


def torchdyn_wrapper_kernel(xT_ref, w1T_ref, bias1_ref, w_aug_ref, bias_aug_ref,
                            outT_ref):
    """Single tile, transposed layout.

    xT_ref:      (D+1, B)   full augmented state, transposed (lane-dense batch)
    w1T_ref:     (H, D+1)   W1 zero-padded for the logp channel, transposed
    bias1_ref:   (H, 1)     b1 + t*wt, folded in the wrapper
    w_aug_ref:   (D+1, 2H)  [[W2^T, 0], [0, -c_scaled]]
    bias_aug_ref:(D+1, 1)   [b2, sum(c_scaled)]
    outT_ref:    (D+1, B)   [dx ; dlogp/scale], transposed
    """
    pre = (jnp.dot(w1T_ref[...], xT_ref[...],
                   preferred_element_type=jnp.float32)
           + bias1_ref[...])                       # (H, B)
    h = jnp.tanh(pre)                              # (H, B)
    g = jnp.concatenate([h, h * h], axis=0)        # (2H, B)
    outT_ref[...] = (jnp.dot(w_aug_ref[...], g,
                             preferred_element_type=jnp.float32)
                     + bias_aug_ref[...]).astype(outT_ref.dtype)


def torchdyn_wrapper_forward(t, x, params, logp_tol_scale=LOGP_TOL_SCALE):
    """Wrapper.forward(t, x) -> (B, D+1). t is a python/JAX scalar."""
    w1, b1, wt, w2, b2 = params
    d, h = w1.shape
    b = x.shape[0]
    t = jnp.asarray(t, jnp.float32)

    # --- weight-only / call-scalar preprocessing (hoisted out of the kernel) --
    # x[..., :-1] is handled by a zero row in W1 for the logp channel.
    w1_pad = jnp.concatenate([w1, jnp.zeros((1, h), jnp.float32)], axis=0)  # (D+1, H)
    w1T = w1_pad.T                                                          # (H, D+1)

    bias1 = (b1 + t * wt).T                                                 # (H, 1)

    # diag(W2 @ W1)[j] = sum_k W1[k, j] * W2[j, k], with -1/scale folded in.
    c_scaled = -jnp.sum(w1 * w2.T, axis=0) / jnp.float32(logp_tol_scale)    # (H,)

    # Augmented second layer: out^T = W_aug @ [h ; h*h] + b_aug
    #   rows 0..D-1 : dx^T  = W2^T @ h + b2^T
    #   row  D      : dlogp = sum(c_scaled) - c_scaled @ h^2
    w_aug = jnp.zeros((d + 1, 2 * h), jnp.float32)
    w_aug = w_aug.at[:d, :h].set(w2.T)
    w_aug = w_aug.at[d, h:].set(-c_scaled)
    bias_aug = jnp.concatenate(
        [b2.reshape(d), jnp.sum(c_scaled)[None]]).reshape(d + 1, 1)         # (D+1, 1)

    xT = x.T                                                                # (D+1, B)

    vmem = pl.BlockSpec(memory_space=pltpu.MemorySpace.VMEM)
    outT = pl.pallas_call(
        torchdyn_wrapper_kernel,
        out_shape=jax.ShapeDtypeStruct((d + 1, b), jnp.float32),
        in_specs=[vmem, vmem, vmem, vmem, vmem],
        out_specs=vmem,
    )(xT, w1T, bias1, w_aug, bias_aug)
    return outT.T


def reference_forward(t, x, params, logp_tol_scale=LOGP_TOL_SCALE):
    """Pure-JAX reference (same math as the PyTorch wrapper with the MLP model)."""
    w1, b1, wt, w2, b2 = params

    def model(t, y):
        hh = jnp.tanh(y @ w1 + b1 + t * wt)
        return hh @ w2 + b2

    xs = x[..., :-1]
    dx = model(t, xs)

    def div_fn_exact(t, x_single):
        vecfield = lambda y: model(t, y[None, :]).reshape(-1)
        J = jax.jacrev(vecfield)(x_single)
        return jnp.trace(J)

    dlogp = -jax.vmap(div_fn_exact, in_axes=(None, 0))(t, xs)
    return jnp.concatenate([dx, dlogp[:, None] / logp_tol_scale], axis=-1)


if __name__ == "__main__":
    key = jax.random.PRNGKey(0)
    kx, k1, k2, k3, k4, k5 = jax.random.split(key, 6)

    x = jax.random.normal(kx, (B, D + 1), dtype=jnp.float32)   # augmented state
    w1 = 0.2 * jax.random.normal(k1, (D, H), dtype=jnp.float32)
    b1 = 0.1 * jax.random.normal(k2, (1, H), dtype=jnp.float32)
    wt = 0.1 * jax.random.normal(k3, (1, H), dtype=jnp.float32)
    w2 = 0.2 * jax.random.normal(k4, (H, D), dtype=jnp.float32)
    b2 = 0.1 * jax.random.normal(k5, (1, D), dtype=jnp.float32)
    params = (w1, b1, wt, w2, b2)
    t = jnp.float32(0.5)

    out = torchdyn_wrapper_forward(t, x, params)
    out = jax.block_until_ready(out)

    ref = reference_forward(t, x, params)
    assert out.shape == (B, D + 1)
    assert jnp.allclose(out, ref, atol=1e-4, rtol=1e-4), "mismatch vs JAX reference"

    print("KERNEL_OK")
</pallas_src>

<mosaic_0001>
module attributes {stable_mosaic.version = 11 : i64} {
  func.func @torchdyn_wrapper_kernel(%arg0: memref<32x128xf32, #tpu.memory_space<vmem>>, %arg1: memref<32x32xf32, #tpu.memory_space<vmem>>, %arg2: memref<32x1xf32, #tpu.memory_space<vmem>>, %arg3: memref<32x64xf32, #tpu.memory_space<vmem>>, %arg4: memref<32x1xf32, #tpu.memory_space<vmem>>, %arg5: memref<32x128xf32, #tpu.memory_space<vmem>>) attributes {dimension_semantics = [], scalar_prefetch = 0 : i64, scratch_operands = 0 : i64, tpu.core_type = #tpu.core_type<tc>} {
    %c0 = arith.constant 0 : index
    %c0_0 = arith.constant 0 : index
    %0 = vector.load %arg1[%c0, %c0_0] : memref<32x32xf32, #tpu.memory_space<vmem>>, vector<32x32xf32>
    %c0_1 = arith.constant 0 : index
    %c0_2 = arith.constant 0 : index
    %1 = vector.load %arg0[%c0_1, %c0_2] : memref<32x128xf32, #tpu.memory_space<vmem>>, vector<32x128xf32>
    %cst = arith.constant dense<0.000000e+00> : vector<32x128xf32>
    %2 = tpu.matmul %0, %1, %cst {dimension_numbers = #tpu.dot_dimension_numbers<[1], [0], [0], [1], [0, 0, 1, 1], [], []>} : vector<32x32xf32>, vector<32x128xf32>, vector<32x128xf32> -> vector<32x128xf32>
    %c0_3 = arith.constant 0 : index
    %c0_4 = arith.constant 0 : index
    %3 = vector.load %arg2[%c0_3, %c0_4] : memref<32x1xf32, #tpu.memory_space<vmem>>, vector<32x1xf32>
    %4 = vector.broadcast %3 : vector<32x1xf32> to vector<32x128xf32>
    %5 = arith.addf %2, %4 : vector<32x128xf32>
    %6 = math.tanh %5 : vector<32x128xf32>
    %7 = arith.mulf %6, %6 : vector<32x128xf32>
    %8 = tpu.concatenate %6, %7 in 0 : vector<32x128xf32>, vector<32x128xf32> -> vector<64x128xf32>
    %c0_5 = arith.constant 0 : index
    %c0_6 = arith.constant 0 : index
    %9 = vector.load %arg3[%c0_5, %c0_6] : memref<32x64xf32, #tpu.memory_space<vmem>>, vector<32x64xf32>
    %cst_7 = arith.constant dense<0.000000e+00> : vector<32x128xf32>
    %10 = tpu.matmul %9, %8, %cst_7 {dimension_numbers = #tpu.dot_dimension_numbers<[1], [0], [0], [1], [0, 0, 1, 1], [], []>} : vector<32x64xf32>, vector<64x128xf32>, vector<32x128xf32> -> vector<32x128xf32>
    %c0_8 = arith.constant 0 : index
    %c0_9 = arith.constant 0 : index
    %11 = vector.load %arg4[%c0_8, %c0_9] : memref<32x1xf32, #tpu.memory_space<vmem>>, vector<32x1xf32>
    %12 = vector.broadcast %11 : vector<32x1xf32> to vector<32x128xf32>
    %13 = arith.addf %10, %12 : vector<32x128xf32>
    %c0_10 = arith.constant 0 : index
    %c0_11 = arith.constant 0 : index
    %14 = vector.load %arg5[%c0_10, %c0_11] : memref<32x128xf32, #tpu.memory_space<vmem>>, vector<32x128xf32>
    tpu.vector_store %arg5[%c0_10, %c0_11], %13 {strides = array<i32>} : memref<32x128xf32, #tpu.memory_space<vmem>>, vector<32x128xf32>,
    return
  }
}

</mosaic_0001>

<bundles_post_ra>
// kernel: tpu_custom_call.1
= control target key start
LH: loop header
LB: loop body
LE: loop exit
PB: predicated region body
PF: predicated region fallthrough
CT: control target
= control target key end

     0   :  { %10 = vsyncpa [#allocation3], 0  ;;  %s592_s0 = inlined_call_operand.vmem [shape: f32[32,128], index: 0, kind: input, shape index: {}]   ;;  %s593_s1 = inlined_call_operand.vmem [shape: f32[32,32], index: 1, kind: input, shape index: {}]   ;;  %s594_s2 = inlined_call_operand.vmem [shape: f32[32,1], index: 2, kind: input, shape index: {}]   ;;  %s595_s3 = inlined_call_operand.hbm [shape: f32[32,64], index: 3, kind: input, shape index: {}]   ;;  %s596_s4 = inlined_call_operand.vmem [shape: f32[32,1], index: 4, kind: input, shape index: {}]   ;;  %s597_s5 = inlined_call_operand.hbm [shape: f32[32,128], index: 5, kind: output, shape index: {}]  }
   0x1   :  { %11 = vsyncpa [#allocation4], 0  ;;  %s471_s18 = smov [#allocation2]   ;;  %s423_s22 = scalar_lea.hbm %s595_s3, 512 }
   0x2   :  { %s23_s19 = sshll.u32 %s471_s18, 4  ;;  %p424_p0 = scmp.ne.s32.totalorder %s595_s3, %s423_s22  ;;  %s24_s19 = int_to_ptr.vmem [resolvable:$true] %s23_s19 }
   0x3   :  { %p427_p1 = scmp.lt.u32.totalorder %s423_s22, %s595_s3 }
   0x5   :  { %p429_p2 = pnand %p427_p1, %p424_p0 }
   0x7   :  { %432 = shalt.err (!%p429_p2)
}
   0x8   :  { %s433_s27 = scalar_lea.vmem %s24_s19, 512  ;;  %p438_p4 = scmp.lt.s32.totalorder %s24_s19, %s24_s19 }
   0x9   :  { %p434_p3 = scmp.ne.s32.totalorder %s24_s19, %s433_s27  ;;  %p439_p5 = scmp.lt.s32.totalorder %s433_s27, %s433_s27 }
   0xb   :  { %p440_p6 = por %p439_p5, %p438_p4 }
   0xd   :  { %p441_p7 = pnand %p440_p6, %p434_p3 }
   0xf   :  { %444 = shalt.err (!%p441_p7)
}
  0x10   :  { %s472_s28 = smov 128   ;;  %s473_s29 = smov 8  }
  0x11   :  { %29 = dma.hbm_to_vmem [thread:$0]  %s595_s3, 512, %s24_s19, [#allocation3], %s472_s28, %s472_s28, %s473_s29  }
  0x12   :  { %467 = dma.done.wait [#allocation3], 512  }
  0x13   :  { %468 = vsyncadd [#allocation3], 4294966784  ;;  %v474_v0 = vmov 0   ;;  %vm67_vm0 = vcmask 261120   ;;  %v39_v1 = vld [vmem:[%s592_s0] sm:$0xff]  ;;  %v40_v2 = vld [vmem:[%s592_s0 + $0x8] sm:$0xff] }
  0x14   :  { %413 = vset.pattern.permute.xlu0 %v474_v0  ;;  %414 = vset.pattern.permute.xlu1 %v474_v0  ;;  %v41_v3 = vld [vmem:[%s592_s0 + $0x10] sm:$0xff]  ;;  %v384_v4 = vpack.c.bf16 %v40_v2, %v39_v1  ;;  %v42_v5 = vld [vmem:[%s592_s0 + $0x18] sm:$0xff]  ;;  %v35_v6 = vld [vmem:[%s593_s1] sm:$0xff]  ;;  %vm201_vm1 = vcmask 523264  }
  0x15   :  { %v388_v7 = vpack.c.bf16 %v42_v5, %v41_v3  ;;  %356 = vmatprep.mubr.msk.f32.mxu0 %vm67_vm0, %v35_v6  ;;  %v43_v8 = vld [vmem:[%s594_s2] sm:$0xff]  ;;  %v45_v9 = vld [vmem:[%s594_s2 + $0x10] sm:$0xff]  ;;  %v44_v10 = vld [vmem:[%s594_s2 + $0x8] sm:$0xff] }
  0x16   :  { %385 = vmatprep.subr.bf16.mxu0 %v384_v4  ;;  %49 = vperm.xlu0 %413, %v43_v8   ;;  %v46_v11 = vld [vmem:[%s594_s2 + $0x18] sm:$0xff]  ;;  %v36_v12 = vld [vmem:[%s593_s1 + $0x8] sm:$0xff]  ;;  %v177_v13 = vld [vmem:[%s596_s4] sm:$0xff] }
  0x17   :  { %387 = vmatpush3.bf16.msra.mxu0 %v384_v4  ;;  %59 = vperm.xlu1 %414, %v45_v9   ;;  %v37_v14 = vld [vmem:[%s593_s1 + $0x10] sm:$0xff]  ;;  %v178_v15 = vld [vmem:[%s596_s4 + $0x8] sm:$0xff]  ;;  %v38_v16 = vld [vmem:[%s593_s1 + $0x18] sm:$0xff]  ;;  %s475_s1 = smov [#allocation5]  }
  0x18   :  { %389 = vmatprep.subr.bf16.mxu0 %v388_v7  ;;  %v179_v17 = vld [vmem:[%s596_s4 + $0x10] sm:$0xff]  ;;  %v180_v18 = vld [vmem:[%s596_s4 + $0x18] sm:$0xff]  ;;  %v173_v19 = vld [vmem:[#allocation2] sm:$0xff]  ;;  %s308_s4 = sshll.u32 %s475_s1, 4  ;;  %s309_s4 = int_to_ptr.vmem [resolvable:$true] %s308_s4 }
  0x19   :  { %378 = vmatprep.mubr.msk.f32.mxu1 %vm201_vm1, %v173_v19  ;;  %v174_v44 = vld [vmem:[#allocation2 + $0x8] sm:$0xff]  ;;  %v175_v45 = vld [vmem:[#allocation2 + $0x10] sm:$0xff]  ;;  %v176_v46 = vld [vmem:[#allocation2 + $0x18] sm:$0xff]  ;;  %s445_s3 = scalar_lea.vmem %s309_s4, 512  ;;  %p450_p9 = scmp.lt.s32.totalorder %s309_s4, %s309_s4 }
  0x1a   :  { %54 = vperm.xlu0 %413, %v44_v10   ;;  %p446_p8 = scmp.ne.s32.totalorder %s309_s4, %s445_s3  ;;  %p451_p10 = scmp.lt.s32.totalorder %s445_s3, %s445_s3 }
  0x1b   :  { %391 = vmatpush3.bf16.msra.mxu0 %v388_v7  ;;  %64 = vperm.xlu1 %414, %v46_v11  }
  0x1c   :  { %p452_p11 = por %p451_p10, %p450_p9 }
  0x1e   :  { %357 = vmatmul.mubr.msk.f32.vlgmr.msra.gmra.mrb[0].mxu0 %vm67_vm0, %v36_v12  ;;  %183 = vperm.xlu0 %413, %v177_v13   ;;  %p453_p12 = pnand %p452_p11, %p446_p8 }
  0x1f   :  { %359 = vmatprep.mubr.msk.f32.mxu0 %vm67_vm0, %v37_v14  ;;  %188 = vperm.xlu1 %414, %v178_v15  }
  0x22   :  { %360 = vmatmul.mubr.msk.f32.gmra.mrb[2].mxu0 %vm67_vm0, %v38_v16  ;;  %193 = vperm.xlu0 %413, %v179_v17  }
  0x23   :  { %198 = vperm.xlu1 %414, %v180_v18  }
  0x95   :  { %v50_v20 = vpop.permute.xlu0 %49 }
  0x96   :  { %v60_v21 = vpop.permute.xlu1 %59 }
  0x99   :  { %v55_v22 = vpop.permute.xlu0 %54 }
  0x9a   :  { %v65_v27 = vpop.permute.xlu1 %64 }
  0x9d   :  { %v184_v48 = vpop.permute.xlu0 %183 }
  0x9e   :  { %v189_v47 = vpop.permute.xlu1 %188 }
  0xa1   :  { %v194_v55 = vpop.permute.xlu0 %193 }
  0xa2   :  { %v199_v53 = vpop.permute.xlu1 %198 }
  0xf1   :  { %v358_v23 = vpop.f32.mrb[0].mxu0 }
  0xf2   :  { %v152_v24 = vadd.f32 %v358_v23, %v55_v22  ;;  %v146_v25 = vpop.f32.mrb[1].mxu0 }
  0xf3   :  { %v147_v26 = vadd.f32 %v146_v25, %v50_v20 }
  0xf4   :  { %415 = vtanh.f32 %v152_v24 }
  0xf5   :  { %417 = vtanh.f32 %v147_v26  ;;  %v361_v28 = vpop.f32.mrb[2].mxu0 }
  0xf6   :  { %v162_v29 = vadd.f32 %v361_v28, %v65_v27  ;;  %v156_v30 = vpop.f32.mrb[3].mxu0 }
  0xf7   :  { %v157_v31 = vadd.f32 %v156_v30, %v60_v21 }
  0xf8   :  { %419 = vtanh.f32 %v162_v29 }
  0xf9   :  { %421 = vtanh.f32 %v157_v31 }
  0xfe   :  { %v416_v32 = vpop.eup %415 }
  0xff   :  { %v418_v33 = vpop.eup %417  ;;  %v170_v34 = vmul.f32 %v416_v32, %v416_v32 }
 0x100   :  { %v392_v35 = vpack.c.bf16 %v416_v32, %v418_v33  ;;  %v169_v36 = vmul.f32 %v418_v33, %v418_v33 }
 0x102   :  { %v420_v37 = vpop.eup %419  ;;  %393 = vmatprep.subr.bf16.mxu1 %v392_v35  ;;  %v400_v38 = vpack.c.bf16 %v170_v34, %v169_v36 }
 0x103   :  { %v422_v39 = vpop.eup %421  ;;  %395 = vmatpush3.bf16.msra.mxu1 %v392_v35  ;;  %v172_v40 = vmul.f32 %v420_v37, %v420_v37 }
 0x104   :  { %v396_v41 = vpack.c.bf16 %v420_v37, %v422_v39  ;;  %v171_v42 = vmul.f32 %v422_v39, %v422_v39 }
 0x106   :  { %397 = vmatprep.subr.bf16.mxu1 %v396_v41  ;;  %v404_v43 = vpack.c.bf16 %v172_v40, %v171_v42 }
 0x107   :  { %399 = vmatpush3.bf16.msra.mxu1 %v396_v41 }
 0x108   :  { %401 = vmatprep.subr.bf16.mxu1 %v400_v38 }
 0x10b   :  { %403 = vmatpush3.bf16.msra.mxu1 %v400_v38 }
 0x10c   :  { %405 = vmatprep.subr.bf16.mxu1 %v404_v43 }
 0x10f   :  { %407 = vmatpush3.bf16.msra.mxu1 %v404_v43 }
 0x112   :  { %379 = vmatmul.mubr.msk.f32.vlgmr.msra.gmra.mrb[0].mxu1 %vm201_vm1, %v174_v44 }
 0x113   :  { %381 = vmatprep.mubr.msk.f32.mxu1 %vm201_vm1, %v175_v45 }
 0x116   :  { %382 = vmatmul.mubr.msk.f32.gmra.mrb[2].mxu1 %vm201_vm1, %v176_v46 }
 0x1e5   :  { %v380_v49 = vpop.f32.mrb[0].mxu1 }
 0x1e6   :  { %v286_v50 = vadd.f32 %v380_v49, %v189_v47  ;;  %v280_v51 = vpop.f32.mrb[1].mxu1 }
 0x1e7   :  { %v281_v52 = vadd.f32 %v280_v51, %v184_v48 }
 0x1e8   :  { %300 = vst [vmem:[#allocation5 + $0x8] sm:$0xff] %v286_v50 }
 0x1e9   :  { %299 = vst [vmem:[#allocation5] sm:$0xff] %v281_v52  ;;  %v383_v54 = vpop.f32.mrb[2].mxu1 }
 0x1ea   :  { %v296_v56 = vadd.f32 %v383_v54, %v199_v53  ;;  %v290_v57 = vpop.f32.mrb[3].mxu1 }
 0x1eb   :  { %v291_v58 = vadd.f32 %v290_v57, %v194_v55 }
 0x1ec   :  { %302 = vst [vmem:[#allocation5 + $0x18] sm:$0xff] %v296_v56 }
 0x1ed   :  { %301 = vst [vmem:[#allocation5 + $0x10] sm:$0xff] %v291_v58 }
 0x1ee   :  { %456 = shalt.err (!%p453_p12)
}
 0x1ef   :  { %s457_s15 = scalar_lea.hbm %s597_s5, 512 }
 0x1f0   :  { %p458_p13 = scmp.ne.s32.totalorder %s597_s5, %s457_s15  ;;  %p461_p0 = scmp.lt.u32.totalorder %s457_s15, %s597_s5 }
 0x1f2   :  { %p463_p1 = pnand %p461_p0, %p458_p13 }
 0x1f4   :  { %466 = shalt.err (!%p463_p1)
}
 0x1f5   :  { %314 = dma.vmem_to_hbm [thread:$0]  %s309_s4, 512, %s597_s5, [#allocation4], %s472_s28, %s472_s28, %s473_s29  }
 0x1f6   :  { %469 = dma.done.wait [#allocation4], 512  }
 0x1f7   :  { %470 = vsyncadd [#allocation4], 4294966784 }
 0x1f8   :  { %318 = vsyncpa [#allocation3], 1 }
 0x1f9   :  { %319 = vsyncpa [#allocation4], 1 }

</bundles_post_ra>
